<compile_context>
chip_gen: v5e
topology: v5e:2x2
jax: 0.10.0
libtpu: 0.0.40
codegen_flags: <defaults>
</compile_context>

<pallas_src>
import functools

import jax
import jax.numpy as jnp
from jax.experimental import pallas as pl
from jax.experimental.pallas import tpu as pltpu


# ---------------------------------------------------------------------------
# Generation-aware sizing for the VMEM-staged path
# ---------------------------------------------------------------------------

def _generation_params():
    """Return (target_block_bytes, vmem_limit_bytes) for the VMEM copy path."""
    try:
        info = pltpu.get_tpu_info()
        vmem = int(getattr(info, "vmem_capacity_bytes"))
    except Exception:  # non-TPU / older API: conservative defaults, safe everywhere
        vmem = 64 << 20
    if vmem <= (64 << 20):
        # v7x: 64 MiB VMEM per TC.  8 MiB blocks -> 32 MiB resident with
        # double buffering on input+output; keep scoped limit <= ~40 MiB.
        return 8 << 20, 40 << 20
    # v5e / v6e: 128 MiB physical VMEM.  8 MiB blocks; raise the scoped limit
    # well past v5e's 16 MiB default (64 MiB is safe on both generations).
    return 8 << 20, 64 << 20


# ---------------------------------------------------------------------------
# Method "dma": HBM -> HBM async-copy identity (no VMEM staging, no grid)
# ---------------------------------------------------------------------------

def _make_dma_copy_kernel(splits):
    """splits: tuple of (start, size) along axis 0, or None for whole-array."""

    def kernel(x_hbm, o_hbm, sem):
        if splits is None:
            cp = pltpu.make_async_copy(x_hbm, o_hbm, sem.at[0])
            cp.start()
            cp.wait()
            return
        # Issue all chunk DMAs first (kept in flight concurrently), wait last.
        copies = []
        for i, (start, size) in enumerate(splits):
            cp = pltpu.make_async_copy(
                x_hbm.at[pl.ds(start, size)],
                o_hbm.at[pl.ds(start, size)],
                sem.at[i],
            )
            cp.start()
            copies.append(cp)
        for cp in copies:
            cp.wait()

    return kernel


def _dma_chunk_splits(x, *, max_chunks=8, min_chunk_bytes=1 << 20):
    """Static chunking of the leading axis into up to `max_chunks` DMAs."""
    if x.ndim == 0 or x.shape[0] <= 1:
        return None
    total_bytes = x.size * jnp.dtype(x.dtype).itemsize
    n = int(min(max_chunks, x.shape[0], max(1, total_bytes // min_chunk_bytes)))
    if n <= 1:
        return None
    base, rem = divmod(x.shape[0], n)
    splits, start = [], 0
    for i in range(n):
        size = base + (1 if i < rem else 0)
        splits.append((start, size))
        start += size
    return tuple(splits)


def _dma_identity_copy(x: jax.Array) -> jax.Array:
    """Materialize y = x via direct HBM->HBM DMA (zero TensorCore work)."""
    if x.size == 0 or x.ndim == 0:
        return jnp.copy(x)
    splits = _dma_chunk_splits(x)
    n_sems = 1 if splits is None else len(splits)
    itemsize = jnp.dtype(x.dtype).itemsize
    return pl.pallas_call(
        _make_dma_copy_kernel(splits),
        out_shape=jax.ShapeDtypeStruct(x.shape, x.dtype),
        in_specs=[pl.BlockSpec(memory_space=pl.ANY)],
        out_specs=pl.BlockSpec(memory_space=pl.ANY),
        scratch_shapes=[pltpu.SemaphoreType.DMA((n_sems,))],
        cost_estimate=pl.CostEstimate(
            flops=0, transcendentals=0, bytes_accessed=2 * x.size * itemsize),
    )(x)


# ---------------------------------------------------------------------------
# Method "vmem": lane-dense BlockSpec-tiled identity copy
# ---------------------------------------------------------------------------

def _identity_block_kernel(x_ref, o_ref):
    # Entire "compute" of StraightThrough: pass the tile through unchanged.
    o_ref[...] = x_ref[...]


def _sublane_multiple(dtype) -> int:
    """Rows per vreg for this dtype (f32: 8, bf16: 16, int8/fp8: 32)."""
    itemsize = jnp.dtype(dtype).itemsize
    if itemsize >= 4:
        return 8
    if itemsize == 2:
        return 16
    return 32


def _pick_lane_cols(n: int, cap: int = 8192) -> int:
    """Largest multiple-of-128 divisor of n that is <= cap (0 if none)."""
    if n % 128 != 0:
        return 0
    d = n // 128
    k = cap // 128
    while k >= 1:
        if d % k == 0:
            return 128 * k
        k -= 1
    return 0


def _vmem_identity_copy(x: jax.Array) -> jax.Array:
    """Materialize y = x via a lane-dense VMEM-staged pipelined copy."""
    if x.size == 0 or x.ndim == 0:
        return jnp.copy(x)

    n = x.size
    dtype = x.dtype
    itemsize = jnp.dtype(dtype).itemsize

    cols = _pick_lane_cols(n)
    if cols == 0:
        # Total size not a multiple of 128: the DMA path is VMEM-free and
        # always legal; never build an unbounded (1, n) block.
        return _dma_identity_copy(x)

    target_block_bytes, vmem_limit_bytes = _generation_params()

    rows = n // cols
    sub = _sublane_multiple(dtype)
    tr = max(1, target_block_bytes // (cols * itemsize))
    tr = (tr // sub) * sub
    if tr == 0:
        tr = sub
    if tr >= rows:
        # Whole tensor fits in one block: split into >=2 sublane-aligned tiles
        # when possible so the "parallel" grid feeds both v7x TensorCores.
        if rows >= 2 * sub:
            half = (rows + 1) // 2
            tr = ((half + sub - 1) // sub) * sub
            if tr >= rows:  # safety (should not trigger)
                tr = rows
        else:
            tr = rows

    # NOTE: reshape of a default-layout contiguous array is a free layout
    # change; callers whose arrays would need a relayout should use the
    # default "dma" method, which never reshapes.
    x2 = x.reshape(rows, cols)
    grid = (pl.cdiv(rows, tr),)  # ragged final block handled by Pallas

    out = pl.pallas_call(
        _identity_block_kernel,
        out_shape=jax.ShapeDtypeStruct((rows, cols), dtype),
        grid=grid,
        in_specs=[pl.BlockSpec((tr, cols), lambda i: (i, 0))],
        out_specs=pl.BlockSpec((tr, cols), lambda i: (i, 0)),
        compiler_params=pltpu.CompilerParams(
            dimension_semantics=("parallel",),
            vmem_limit_bytes=vmem_limit_bytes,
        ),
        cost_estimate=pl.CostEstimate(
            flops=0, transcendentals=0, bytes_accessed=2 * n * itemsize),
    )(x2)

    return out.reshape(x.shape)


# ---------------------------------------------------------------------------
# Public API (with straight-through gradient on the copy path)
# ---------------------------------------------------------------------------

@functools.partial(jax.custom_vjp, nondiff_argnums=(1,))
def _identity_copy(x, method):
    if method == "vmem":
        return _vmem_identity_copy(x)
    return _dma_identity_copy(x)


def _identity_copy_fwd(x, method):
    return _identity_copy(x, method), None


def _identity_copy_bwd(method, _, g):
    return (g,)  # straight-through: identity backward


_identity_copy.defvjp(_identity_copy_fwd, _identity_copy_bwd)


def straight_through(x: jax.Array, *, materialize_copy: bool = False,
                     method: str = "dma") -> jax.Array:
    """StraightThrough.forward: y = x.

    Default path performs no HBM traffic at all (pure pass-through, the
    correct "kernel" for an identity op).  Set materialize_copy=True to force
    a Pallas identity copy producing a distinct buffer; method is "dma"
    (HBM->HBM async copy, default) or "vmem" (tiled BlockSpec pipeline).
    """
    if not materialize_copy:
        return x
    return _identity_copy(x, method)


if __name__ == "__main__":
    key = jax.random.PRNGKey(0)
    # NCHW input consistent with typical use of StraightThrough in quant layers.
    x = jax.random.normal(key, (2, 4, 16, 16), dtype=jnp.float32)

    # 1) Optimal path: zero-copy pass-through.
    y = jax.block_until_ready(straight_through(x))
    assert y.shape == x.shape and y.dtype == x.dtype, (y.shape, y.dtype)
    assert bool(jnp.all(y == x)), "identity mismatch (pass-through)"

    # 2) Materialized copy via HBM->HBM DMA (default copy method).
    y_dma = jax.block_until_ready(straight_through(x, materialize_copy=True))
    assert y_dma.shape == x.shape and y_dma.dtype == x.dtype
    assert bool(jnp.all(y_dma == x)), "identity mismatch (dma copy)"

    # 3) Materialized copy via the VMEM-staged tiled pipeline.
    y_vmem = jax.block_until_ready(
        straight_through(x, materialize_copy=True, method="vmem"))
    assert y_vmem.shape == x.shape and y_vmem.dtype == x.dtype
    assert bool(jnp.all(y_vmem == x)), "identity mismatch (vmem copy)"

    # 4) Straight-through gradient: identity backward even on the copy path.
    g = jax.grad(lambda t: jnp.sum(straight_through(t, materialize_copy=True)))(x)
    g = jax.block_until_ready(g)
    assert bool(jnp.all(g == 1.0)), "straight-through gradient mismatch"

    print("KERNEL_OK")
</pallas_src>

<mosaic_0001>
module attributes {stable_mosaic.version = 11 : i64} {
  func.func @kernel(%arg0: memref<2x4x16x16xf32, #tpu.memory_space<any>>, %arg1: memref<2x4x16x16xf32, #tpu.memory_space<any>>, %arg2: memref<1x!tpu.dma_semaphore, #tpu.memory_space<semaphore_mem>>) attributes {dimension_semantics = [], scalar_prefetch = 0 : i64, scratch_operands = 1 : i64, tpu.core_type = #tpu.core_type<tc>} {
    %c0_i32 = arith.constant 0 : i32
    %0 = tpu.memref_slice %arg2[%c0_i32] : memref<1x!tpu.dma_semaphore, #tpu.memory_space<semaphore_mem>> -> memref<1x!tpu.dma_semaphore, #tpu.memory_space<semaphore_mem>>
    %1 = tpu.memref_squeeze %0 : memref<1x!tpu.dma_semaphore, #tpu.memory_space<semaphore_mem>> -> memref<!tpu.dma_semaphore, #tpu.memory_space<semaphore_mem>>
    tpu.enqueue_dma source(%arg0 : memref<2x4x16x16xf32, #tpu.memory_space<any>>) target(%arg1 : memref<2x4x16x16xf32, #tpu.memory_space<any>>) target_semaphore(%1 : memref<!tpu.dma_semaphore, #tpu.memory_space<semaphore_mem>>)
    %c0_i32_0 = arith.constant 0 : i32
    %2 = tpu.memref_slice %arg2[%c0_i32_0] : memref<1x!tpu.dma_semaphore, #tpu.memory_space<semaphore_mem>> -> memref<1x!tpu.dma_semaphore, #tpu.memory_space<semaphore_mem>>
    %3 = tpu.memref_squeeze %2 : memref<1x!tpu.dma_semaphore, #tpu.memory_space<semaphore_mem>> -> memref<!tpu.dma_semaphore, #tpu.memory_space<semaphore_mem>>
    tpu.wait_dma2 semaphore(%3 : memref<!tpu.dma_semaphore, #tpu.memory_space<semaphore_mem>>) src(%arg0 : memref<2x4x16x16xf32, #tpu.memory_space<any>>) dst(%arg1 : memref<2x4x16x16xf32, #tpu.memory_space<any>>)
    return
  }
}

</mosaic_0001>

<bundles_post_ra>
// kernel: tpu_custom_call.1
= control target key start
LH: loop header
LB: loop body
LE: loop exit
PB: predicated region body
PF: predicated region fallthrough
CT: control target
= control target key end

     0   :  { %s34_s12 = smov [#allocation2]   ;;  %s35_s13 = smov [#allocation3]   ;;  %s53_s0 = inlined_call_operand.hbm [shape: f32[2,4,16,16], index: 0, kind: input, shape index: {}]   ;;  %s54_s1 = inlined_call_operand.hbm [shape: f32[2,4,16,16], index: 1, kind: output, shape index: {}]  }
   0x1   :  { %s10_s8 = sshll.u32 %s53_s0, 4  ;;  %s12_s11 = sshll.u32 %s54_s1, 4  ;;  %s11_s8 = int_to_ptr.hbm [resolvable:$true] %s10_s8  ;;  %s13_s11 = int_to_ptr.hbm [resolvable:$true] %s12_s11 }
   0x2   :  { %s36_s14 = smov 0  }
   0x3   :  { %16 = dma.general %s11_s8, 2048, %s13_s11, %s34_s12, %s35_s13, [#allocation4], %s36_s14, 0  }
   0x4   :  { %32 = dma.done.wait [#allocation2], 2048 }
   0x5   :  { %33 = vsyncadd [#allocation2], 4294965248 }
   0x6   :  { %22 = vsyncmov [#allocation2] }
   0x9   :  { %s23_s15 = vpop.sfrf %22 }
   0xa   :  { %p28_p0 = scmp.ne.s32.totalorder %s23_s15, 0 }
   0xc   :  { %27 = shalt.err (%p28_p0)  }

</bundles_post_ra>
